<compile_context>
chip_gen: v6e
topology: v6e:2x2x1
jax: 0.10.0
libtpu: 0.0.40
codegen_flags: <defaults>
</compile_context>

<pallas_src>
import functools

import numpy as np
import jax
import jax.numpy as jnp
from jax.experimental import pallas as pl
from jax.experimental.pallas import tpu as pltpu


# ----------------------------------------------------------------------------
# Hardware-aware budgets.
# ----------------------------------------------------------------------------
def _vmem_limit_bytes():
    """~7/8 of physical per-core VMEM: ~56 MiB on v7x, ~112 MiB on v5e/v6e."""
    try:
        cap = int(pltpu.get_tpu_info().vmem_capacity_bytes)
    except Exception:
        cap = 64 * 1024 * 1024          # conservative fallback (v7x per-TC)
    return (cap * 7) // 8


def _elementwise_dtype():
    """bf16 GELU math on v6e/v7x (bf16 VALU/EUP); f32 on v5e and older."""
    try:
        kind = jax.devices()[0].device_kind.lower()
    except Exception:
        return jnp.float32
    if ("v6" in kind) or ("v7" in kind) or ("7x" in kind):
        return jnp.bfloat16
    return jnp.float32


def _pick_tile(total, target, quantum):
    """Largest divisor of `total` that is <= target and a multiple of `quantum`.
    Falls back to `total` (single full block) when no such divisor exists."""
    if total <= target:
        return total
    t = (target // quantum) * quantum
    while t >= quantum:
        if total % t == 0:
            return t
        t -= quantum
    return total   # awkward shapes: full dim (legal, but uses more VMEM)


# ----------------------------------------------------------------------------
# Exact (erf-based) GELU, matching torch.nn.GELU() default.
# ----------------------------------------------------------------------------
_INV_SQRT2 = 0.7071067811865476


def _erf_poly(x):
    # TODO(synk): Abramowitz & Stegun 7.1.26 polynomial fallback (|err|<1.5e-7),
    # only used if the erf primitive has no Mosaic lowering on this jax build.
    a1, a2, a3, a4, a5 = (0.254829592, -0.284496736, 1.421413741,
                          -1.453152027, 1.061405429)
    p = 0.3275911
    s = jnp.sign(x)
    ax = jnp.abs(x)
    t = 1.0 / (1.0 + p * ax)            # exact divide: keep the erf fidelity
    poly = ((((a5 * t + a4) * t + a3) * t + a2) * t + a1) * t
    return s * (1.0 - poly * jnp.exp(-ax * ax))


def _gelu_exact(x, erf_fn):
    # Python-float constants stay weakly typed -> the math runs in x.dtype
    # (bf16 on v6e/v7x, f32 on v5e).
    return 0.5 * x * (1.0 + erf_fn(x * _INV_SQRT2))


def make_gelu(ew_dtype):
    """Pick the best GELU implementation that lowers in a Pallas TPU kernel."""
    erf = jax.scipy.special.erf
    candidates = [
        lambda v: _gelu_exact(v, erf),                                   # erf @ ew_dtype
        lambda v: _gelu_exact(v, lambda u: erf(u.astype(jnp.float32))
                              .astype(u.dtype)),                         # erf @ f32
        lambda v: _gelu_exact(v.astype(jnp.float32), _erf_poly),         # poly @ f32
    ]
    for fn in candidates:
        def probe_kernel(x_ref, o_ref, fn=fn):
            o_ref[...] = fn(x_ref[...].astype(ew_dtype)).astype(jnp.float32)
        try:
            probe = pl.pallas_call(
                probe_kernel,
                out_shape=jax.ShapeDtypeStruct((8, 128), jnp.float32))
            jax.block_until_ready(probe(jnp.ones((8, 128), jnp.float32)))
            return fn
        except Exception:
            continue
    return candidates[-1]


# ----------------------------------------------------------------------------
# Kernel 1: switch router  (Linear(s0*D -> E) + softmax), K-tiled reduction.
# ----------------------------------------------------------------------------
def _router_kernel(xf_ref, wt_ref, b_ref, probs_ref, acc_ref):
    k = pl.program_id(0)

    @pl.when(k == 0)
    def _init():
        acc_ref[...] = jnp.zeros_like(acc_ref)

    # x0 tile arrives in f32; cast to the weight dtype (bf16) in-kernel so the
    # MXU runs at native bf16 rate without an extra wrapper cast pass over x.
    acc_ref[...] += jnp.dot(xf_ref[...].astype(wt_ref.dtype), wt_ref[...],
                            preferred_element_type=jnp.float32)

    @pl.when(k == pl.num_programs(0) - 1)
    def _finalize():
        logits = acc_ref[...] + b_ref[...]
        m = jnp.max(logits, axis=-1, keepdims=True)
        e = jnp.exp(logits - m)
        probs_ref[...] = e / jnp.sum(e, axis=-1, keepdims=True)


# ----------------------------------------------------------------------------
# Kernel 2: expert MLP with expert skipping.
#   grid = (B, ns, topk); only the selected expert's x slice / weights are
#   DMA'd per step (index_maps read the scalar-prefetched top_idx).
#   out[b, s_tile] = b2 + sum_{selected e} gelu(x_e @ W1[e] + b1[e]) @ W2t[e]
# ----------------------------------------------------------------------------
def _moe_mlp_kernel(idx_ref, xs_ref, w1_ref, b1_ref, w2t_ref, b2_ref,
                    o_ref, acc_ref, *, gelu_fn, ew_dtype):
    del idx_ref                                           # used by index_maps only
    kk = pl.program_id(2)

    @pl.when(kk == 0)
    def _init():
        acc_ref[...] = jnp.zeros_like(acc_ref)

    ts, sub_d = xs_ref.shape[-2], xs_ref.shape[-1]
    xe = xs_ref[...].reshape(ts, sub_d).astype(w1_ref.dtype)   # f32 -> bf16 in-kernel
    he = jnp.dot(xe, w1_ref[0],                                # MXU, f32 accum
                 preferred_element_type=jnp.float32) + b1_ref[0]
    act = gelu_fn(he.astype(ew_dtype))                         # exact nn.GELU()
    acc_ref[...] += jnp.dot(act.astype(w2t_ref.dtype), w2t_ref[0],
                            preferred_element_type=jnp.float32)

    @pl.when(kk == pl.num_programs(2) - 1)
    def _finalize():
        o_ref[0] = (acc_ref[...] + b2_ref[...]).astype(o_ref.dtype)


# ----------------------------------------------------------------------------
# Forward pass (Pallas kernels + thin JAX glue for top-k dispatch).
# ----------------------------------------------------------------------------
def s_mh_mlp1_forward(x, prepped, *, n_experts, topk, gelu_fn, ew_dtype):
    B, S, D = x.shape
    E = n_experts
    sub_d = D // E
    sub_h = prepped["w1"].shape[2]
    vmem_limit = _vmem_limit_bytes()
    budget = int(vmem_limit * 0.7)       # headroom for compiler-internal scratch

    # --- switch router:  x0 = x[:, :2048]  -----------------------------------
    s0 = min(S, 2048)
    s0d = s0 * D
    assert prepped["switch_wt"].shape[0] == s0d, (
        "switch weight (max_seq_len*dim) must match the x[:, :2048] flatten")
    xf = x[:, :s0, :].reshape(B, s0d)    # stays f32; cast happens in-kernel

    # Budget-aware K tile: dbl-buffered f32 xf tile + bf16 weight tile per tk.
    per_tk = 2 * (B * 4 + E * 2)
    tk_target = max(128, (budget // per_tk) // 128 * 128)
    tk = _pick_tile(s0d, min(tk_target, s0d), 128)
    nk = s0d // tk

    probs = pl.pallas_call(
        _router_kernel,
        out_shape=jax.ShapeDtypeStruct((B, E), jnp.float32),
        grid=(nk,),
        in_specs=[
            pl.BlockSpec((B, tk), lambda k: (0, k)),           # x0 flatten tile (f32)
            pl.BlockSpec((tk, E), lambda k: (k, 0)),           # switch.weight^T (bf16)
            pl.BlockSpec((1, E), lambda k: (0, 0)),            # switch.bias (f32)
        ],
        out_specs=pl.BlockSpec((B, E), lambda k: (0, 0)),
        scratch_shapes=[pltpu.VMEM((B, E), jnp.float32)],
        # TODO(synk): on v7x, split the K reduction over a second "parallel"
        # axis (two partial accumulators) so both TensorCores stream the weight.
        compiler_params=pltpu.CompilerParams(
            dimension_semantics=("arbitrary",),
            vmem_limit_bytes=vmem_limit),
    )(xf, prepped["switch_wt"], prepped["switch_b"])

    # --- top-k expert selection (glue; mirrors assumed preprocess2) ----------
    # TODO(synk): assumes selection-only routing (no route_prob scaling of the
    # expert outputs), matching the index_add_ semantics of the torch module.
    _, top_idx = jax.lax.top_k(probs, topk)                    # [B, k]
    top_idx = top_idx.reshape(-1).astype(jnp.int32)            # [B*k] for SMEM

    # --- sequence tile: pick ts so ns == 1 whenever the VMEM budget allows
    #     (W1/b1/W2t are then DMA'd once per (batch, selected expert)). -------
    out_bytes = x.dtype.itemsize
    fixed = 4 * (sub_d * sub_h + sub_h * D) + 4 * sub_h + 4 * D   # dbl-buf bf16 W1/W2t + biases
    per_ts = 8 * sub_d + 2 * out_bytes * D + 4 * D                # dbl f32 x slice + dbl out + f32 acc
    ts_target = max(16, max(budget - fixed, 16 * per_ts) // per_ts)
    ts = _pick_tile(S, min(S, ts_target), 16)                     # quantum 16: bf16 sublane packing
    ns = S // ts
    # TODO(synk): when `fixed` alone approaches the budget (very large models on
    # v7x's 64 MiB), add a D-tile grid axis for W2t/out/acc instead of shrinking ts.

    # --- x layout: index x[B,S,D] directly when the expert slice is lane-
    #     aligned; fall back to an expert-major split only for toy shapes. ----
    if sub_d % 128 == 0 or E == 1:
        x_in = x                                               # no copy, no cast
        x_spec = pl.BlockSpec(
            (1, ts, sub_d), lambda b, si, kk, idx: (b, si, idx[b * topk + kk]))
    else:
        x_in = x.reshape(B, S, E, sub_d).transpose(0, 2, 1, 3)  # [B,E,S,sub_d] (toy only)
        x_spec = pl.BlockSpec(
            (1, 1, ts, sub_d), lambda b, si, kk, idx: (b, idx[b * topk + kk], si, 0))

    kernel = functools.partial(_moe_mlp_kernel, gelu_fn=gelu_fn, ew_dtype=ew_dtype)
    grid_spec = pltpu.PrefetchScalarGridSpec(
        num_scalar_prefetch=1,                                  # top_idx -> SMEM
        grid=(B, ns, topk),
        in_specs=[
            x_spec,
            # W1[e], b1[e], W2^T rows of the selected expert e
            pl.BlockSpec((1, sub_d, sub_h),
                         lambda b, si, kk, idx: (idx[b * topk + kk], 0, 0)),
            pl.BlockSpec((1, 1, sub_h),
                         lambda b, si, kk, idx: (idx[b * topk + kk], 0, 0)),
            pl.BlockSpec((1, sub_h, D),
                         lambda b, si, kk, idx: (idx[b * topk + kk], 0, 0)),
            # linear2 bias (shared)
            pl.BlockSpec((1, D), lambda b, si, kk, idx: (0, 0)),
        ],
        out_specs=pl.BlockSpec((1, ts, D), lambda b, si, kk, idx: (b, si, 0)),
        scratch_shapes=[pltpu.VMEM((ts, D), jnp.float32)],      # f32 accumulator
    )
    out = pl.pallas_call(
        kernel,
        out_shape=jax.ShapeDtypeStruct((B, S, D), x.dtype),
        grid_spec=grid_spec,
        compiler_params=pltpu.CompilerParams(
            dimension_semantics=("parallel", "parallel", "arbitrary"),
            vmem_limit_bytes=vmem_limit),
    )(top_idx, x_in, prepped["w1"], prepped["b1"], prepped["w2t"], prepped["b2"])
    # drop1 / drop2 are identity in eval mode.
    return out


# ----------------------------------------------------------------------------
# Parameter init (PyTorch-Linear-style uniform bounds) and one-time prep.
# ----------------------------------------------------------------------------
def init_params(key, *, S, D, H, E):
    sub_d, sub_h = D // E, H // E
    ks = jax.random.split(key, 6)

    def uinit(k, shape, fan_in):
        bound = 1.0 / np.sqrt(fan_in)
        return jax.random.uniform(k, shape, jnp.float32, -bound, bound)

    return {
        "switch_wt": uinit(ks[0], (S * D, E), S * D),          # switch.weight^T
        "switch_b":  uinit(ks[1], (1, E), S * D),
        "w1":        uinit(ks[2], (E, sub_d, sub_h), sub_d),   # linear1[e].weight^T
        "b1":        uinit(ks[3], (E, sub_h), sub_d),
        "w2t":       uinit(ks[4], (H, D), H),                  # linear2.weight^T
        "b2":        uinit(ks[5], (1, D), H),
    }


def prepare_params(params, *, n_experts, compute_dtype=jnp.bfloat16):
    """One-time dtype/layout prep (amortized across forward calls)."""
    E = n_experts
    _, sub_d, sub_h = params["w1"].shape
    H, D = params["w2t"].shape
    return {
        "switch_wt": params["switch_wt"].astype(compute_dtype),
        "switch_b":  params["switch_b"],
        "w1":        params["w1"].astype(compute_dtype),
        "b1":        params["b1"].reshape(E, 1, sub_h),
        "w2t":       params["w2t"].reshape(E, sub_h, D).astype(compute_dtype),
        "b2":        params["b2"],
    }


# ----------------------------------------------------------------------------
# Pure-JAX reference (dense masked formulation of the torch module).  MXU
# operands are rounded to bf16 to emulate the kernel's compute dtype so the
# comparison (including top-k decisions) is apples-to-apples.
# ----------------------------------------------------------------------------
def reference_forward(x, params, *, n_experts, topk):
    B, S, D = x.shape
    E = n_experts
    H = params["w2t"].shape[0]
    sub_d, sub_h = D // E, H // E

    def r(a):
        return a.astype(jnp.bfloat16).astype(jnp.float32)

    s0 = min(S, 2048)
    xf = x[:, :s0, :].reshape(B, s0 * D)
    logits = r(xf) @ r(params["switch_wt"]) + params["switch_b"]
    probs = jax.nn.softmax(logits, axis=-1)
    _, top_idx = jax.lax.top_k(probs, topk)
    mask = jnp.zeros((B, E)).at[jnp.arange(B)[:, None], top_idx].set(1.0)

    hid = jnp.zeros((B, S, H), jnp.float32)
    for e in range(E):
        xe = x[:, :, e * sub_d:(e + 1) * sub_d]
        he = r(xe) @ r(params["w1"][e]) + params["b1"][e]
        hid = hid.at[:, :, e * sub_h:(e + 1) * sub_h].set(
            he * mask[:, e][:, None, None])
    act = jax.nn.gelu(hid, approximate=False)
    return r(act) @ r(params["w2t"]) + params["b2"][0]


if __name__ == "__main__":
    ew_dtype = _elementwise_dtype()
    gelu_fn = make_gelu(ew_dtype)

    # Small configs consistent with the module (max_seq_len == seq_len):
    #  A) toy shapes -> exercises the expert-split fallback path.
    #  B) lane-aligned (sub_d = 128) -> exercises the direct x[B,S,D] indexing.
    configs = [
        dict(B=2, S=8, D=32, H=64, E=4, K=2),
        dict(B=2, S=16, D=512, H=1024, E=4, K=2),
    ]
    for c in configs:
        key = jax.random.PRNGKey(0)
        kp, kx = jax.random.split(key)
        params = init_params(kp, S=c["S"], D=c["D"], H=c["H"], E=c["E"])
        prepped = prepare_params(params, n_experts=c["E"])
        x = jax.random.normal(kx, (c["B"], c["S"], c["D"]), jnp.float32)

        out = s_mh_mlp1_forward(x, prepped, n_experts=c["E"], topk=c["K"],
                                gelu_fn=gelu_fn, ew_dtype=ew_dtype)
        out = jax.block_until_ready(out)
        assert out.shape == (c["B"], c["S"], c["D"])

        ref = reference_forward(x, params, n_experts=c["E"], topk=c["K"])
        np.testing.assert_allclose(np.asarray(out), np.asarray(ref),
                                   rtol=3e-2, atol=3e-2)
    print("KERNEL_OK")
</pallas_src>

<mosaic_0001>
module attributes {stable_mosaic.version = 11 : i64} {
  func.func @probe_kernel(%arg0: memref<8x128xf32, #tpu.memory_space<vmem>>, %arg1: memref<8x128xf32, #tpu.memory_space<vmem>>) attributes {dimension_semantics = [], scalar_prefetch = 0 : i64, scratch_operands = 0 : i64, tpu.core_type = #tpu.core_type<tc>} {
    %c0 = arith.constant 0 : index
    %c0_0 = arith.constant 0 : index
    %0 = vector.load %arg0[%c0, %c0_0] : memref<8x128xf32, #tpu.memory_space<vmem>>, vector<8x128xf32>
    %cst = arith.constant 5.000000e-01 : f32
    %1 = vector.broadcast %cst : f32 to vector<8x128xf32>
    %2 = arith.mulf %1, %0 : vector<8x128xf32>
    %cst_1 = arith.constant 0.707106769 : f32
    %3 = vector.broadcast %cst_1 : f32 to vector<8x128xf32>
    %4 = arith.mulf %0, %3 : vector<8x128xf32>
    %5 = math.erf %4 : vector<8x128xf32>
    %cst_2 = arith.constant 1.000000e+00 : f32
    %6 = vector.broadcast %cst_2 : f32 to vector<8x128xf32>
    %7 = arith.addf %6, %5 : vector<8x128xf32>
    %8 = arith.mulf %2, %7 : vector<8x128xf32>
    %c0_3 = arith.constant 0 : index
    %c0_4 = arith.constant 0 : index
    %9 = vector.load %arg1[%c0_3, %c0_4] : memref<8x128xf32, #tpu.memory_space<vmem>>, vector<8x128xf32>
    tpu.vector_store %arg1[%c0_3, %c0_4], %8 {strides = array<i32>} : memref<8x128xf32, #tpu.memory_space<vmem>>, vector<8x128xf32>,
    return
  }
}

module attributes {stable_mosaic.version = 11 : i64} {
  func.func @probe_kernel(%arg0: memref<8x128xf32, #tpu.memory_space<vmem>>, %arg1: memref<8x128xf32, #tpu.memory_space<vmem>>) attributes {dimension_semantics = [], scalar_prefetch = 0 : i64, scratch_operands = 0 : i64, tpu.core_type = #tpu.core_type<tc>} {
    %c0 = arith.constant 0 : index
    %c0_0 = arith.constant 0 : index
    %0 = vector.load %arg0[%c0, %c0_0] : memref<8x128xf32, #tpu.memory_space<vmem>>, vector<8x128xf32>
    %cst = arith.constant 5.000000e-01 : f32
    %1 = vector.broadcast %cst : f32 to vector<8x128xf32>
    %2 = arith.mulf %1, %0 : vector<8x128xf32>
    %cst_1 = arith.constant 0.707106769 : f32
    %3 = vector.broadcast %cst_1 : f32 to vector<8x128xf32>
    %4 = arith.mulf %0, %3 : vector<8x128xf32>
    %5 = math.erf %4 : vector<8x128xf32>
    %cst_2 = arith.constant 1.000000e+00 : f32
    %6 = vector.broadcast %cst_2 : f32 to vector<8x128xf32>
    %7 = arith.addf %6, %5 : vector<8x128xf32>
    %8 = arith.mulf %2, %7 : vector<8x128xf32>
    %c0_3 = arith.constant 0 : index
    %c0_4 = arith.constant 0 : index
    %9 = vector.load %arg1[%c0_3, %c0_4] : memref<8x128xf32, #tpu.memory_space<vmem>>, vector<8x128xf32>
    tpu.vector_store %arg1[%c0_3, %c0_4], %8 {strides = array<i32>} : memref<8x128xf32, #tpu.memory_space<vmem>>, vector<8x128xf32>,
    return
  }
}

module attributes {stable_mosaic.version = 11 : i64} {
  func.func @_router_kernel(%arg0: i32, %arg1: memref<2x256xf32, #tpu.memory_space<vmem>>, %arg2: memref<256x4xbf16, #tpu.memory_space<vmem>>, %arg3: memref<1x4xf32, #tpu.memory_space<vmem>>, %arg4: memref<2x4xf32, #tpu.memory_space<vmem>>, %arg5: memref<2x4xf32, #tpu.memory_space<vmem>>) attributes {dimension_semantics = [#tpu.dimension_semantics<arbitrary>], iteration_bounds = array<i64: 1>, scalar_prefetch = 0 : i64, scratch_operands = 1 : i64, tpu.core_type = #tpu.core_type<tc>, window_params = [{transform_indices = @transform_0, window_bounds = array<i64: 2, 256>}, {transform_indices = @transform_1, window_bounds = array<i64: 256, 4>}, {pipeline_mode = #tpu.pipeline_mode<synchronous>, transform_indices = @transform_2, window_bounds = array<i64: 1, 4>}, {pipeline_mode = #tpu.pipeline_mode<synchronous>, transform_indices = @transform_3, window_bounds = array<i64: 2, 4>}]} {
    %c0_i32 = arith.constant 0 : i32
    %0 = arith.cmpi eq, %arg0, %c0_i32 : i32
    %1 = arith.extui %0 : i1 to i32
    %c0_i32_0 = arith.constant 0 : i32
    %2 = arith.cmpi ne, %1, %c0_i32_0 : i32
    scf.if %2 {
      %cst_10 = arith.constant 0.000000e+00 : f32
      %13 = vector.broadcast %cst_10 : f32 to vector<2x4xf32>
      %c0_11 = arith.constant 0 : index
      %c0_12 = arith.constant 0 : index
      %14 = vector.load %arg5[%c0_11, %c0_12] : memref<2x4xf32, #tpu.memory_space<vmem>>, vector<2x4xf32>
      tpu.vector_store %arg5[%c0_11, %c0_12], %13 {strides = array<i32>} : memref<2x4xf32, #tpu.memory_space<vmem>>, vector<2x4xf32>,
    } else {
    }
    %c0 = arith.constant 0 : index
    %c0_1 = arith.constant 0 : index
    %3 = vector.load %arg5[%c0, %c0_1] : memref<2x4xf32, #tpu.memory_space<vmem>>, vector<2x4xf32>
    %c0_2 = arith.constant 0 : index
    %c0_3 = arith.constant 0 : index
    %4 = vector.load %arg1[%c0_2, %c0_3] : memref<2x256xf32, #tpu.memory_space<vmem>>, vector<2x256xf32>
    %5 = arith.truncf %4 : vector<2x256xf32> to vector<2x256xbf16>
    %c0_4 = arith.constant 0 : index
    %c0_5 = arith.constant 0 : index
    %6 = vector.load %arg2[%c0_4, %c0_5] : memref<256x4xbf16, #tpu.memory_space<vmem>>, vector<256x4xbf16>
    %cst = arith.constant dense<0.000000e+00> : vector<2x4xf32>
    %7 = tpu.matmul %5, %6, %cst {dimension_numbers = #tpu.dot_dimension_numbers<[1], [0], [0], [1], [0, 0, 1, 1], [], []>} : vector<2x256xbf16>, vector<256x4xbf16>, vector<2x4xf32> -> vector<2x4xf32>
    %8 = arith.addf %3, %7 : vector<2x4xf32>
    %c0_6 = arith.constant 0 : index
    %c0_7 = arith.constant 0 : index
    %9 = vector.load %arg5[%c0_6, %c0_7] : memref<2x4xf32, #tpu.memory_space<vmem>>, vector<2x4xf32>
    tpu.vector_store %arg5[%c0_6, %c0_7], %8 {strides = array<i32>} : memref<2x4xf32, #tpu.memory_space<vmem>>, vector<2x4xf32>,
    %c0_i32_8 = arith.constant 0 : i32
    %10 = arith.cmpi eq, %arg0, %c0_i32_8 : i32
    %11 = arith.extui %10 : i1 to i32
    %c0_i32_9 = arith.constant 0 : i32
    %12 = arith.cmpi ne, %11, %c0_i32_9 : i32
    scf.if %12 {
      %c0_10 = arith.constant 0 : index
      %c0_11 = arith.constant 0 : index
      %13 = vector.load %arg5[%c0_10, %c0_11] : memref<2x4xf32, #tpu.memory_space<vmem>>, vector<2x4xf32>
      %c0_12 = arith.constant 0 : index
      %c0_13 = arith.constant 0 : index
      %14 = vector.load %arg3[%c0_12, %c0_13] : memref<1x4xf32, #tpu.memory_space<vmem>>, vector<1x4xf32>
      %15 = vector.broadcast %14 : vector<1x4xf32> to vector<2x4xf32>
      %16 = arith.addf %13, %15 : vector<2x4xf32>
      %cst_14 = arith.constant dense<0xFF800000> : vector<2xf32>
      %17 = vector.multi_reduction <maximumf>, %16, %cst_14 [1] : vector<2x4xf32> to vector<2xf32>
      %18 = vector.shape_cast %17 : vector<2xf32> to vector<2x1xf32>
      %19 = vector.broadcast %18 : vector<2x1xf32> to vector<2x4xf32>
      %20 = arith.subf %16, %19 : vector<2x4xf32>
      %21 = math.exp %20 : vector<2x4xf32>
      %cst_15 = arith.constant dense<0.000000e+00> : vector<2xf32>
      %22 = vector.multi_reduction <add>, %21, %cst_15 [1] : vector<2x4xf32> to vector<2xf32>
      %23 = vector.shape_cast %22 : vector<2xf32> to vector<2x1xf32>
      %24 = vector.broadcast %23 : vector<2x1xf32> to vector<2x4xf32>
      %25 = arith.divf %21, %24 : vector<2x4xf32>
      %c0_16 = arith.constant 0 : index
      %c0_17 = arith.constant 0 : index
      %26 = vector.load %arg4[%c0_16, %c0_17] : memref<2x4xf32, #tpu.memory_space<vmem>>, vector<2x4xf32>
      tpu.vector_store %arg4[%c0_16, %c0_17], %25 {strides = array<i32>} : memref<2x4xf32, #tpu.memory_space<vmem>>, vector<2x4xf32>,
    } else {
    }
    return
  }
  func.func @transform_0(%arg0: i32) -> (i32, i32) {
    %c0_i32 = arith.constant 0 : i32
    %c0_i32_0 = arith.constant 0 : i32
    return %c0_i32, %arg0 : i32, i32
  }
  func.func @transform_1(%arg0: i32) -> (i32, i32) {
    %c0_i32 = arith.constant 0 : i32
    %c0_i32_0 = arith.constant 0 : i32
    return %arg0, %c0_i32 : i32, i32
  }
  func.func @transform_2(%arg0: i32) -> (i32, i32) {
    %c0_i32 = arith.constant 0 : i32
    %c0_i32_0 = arith.constant 0 : i32
    %c0_i32_1 = arith.constant 0 : i32
    return %c0_i32, %c0_i32_0 : i32, i32
  }
  func.func @transform_3(%arg0: i32) -> (i32, i32) {
    %c0_i32 = arith.constant 0 : i32
    %c0_i32_0 = arith.constant 0 : i32
    %c0_i32_1 = arith.constant 0 : i32
    return %c0_i32, %c0_i32_0 : i32, i32
  }
}

</mosaic_0001>

<bundles_post_ra>
// kernel: tpu_custom_call.1
= control target key start
LH: loop header
LB: loop body
LE: loop exit
PB: predicated region body
PF: predicated region fallthrough
CT: control target
= control target key end

     0   :  { %6 = vsyncpa [#allocation3], 0  ;;  %s109_s0 = inlined_call_operand.hbm [shape: f32[8,128], index: 0, kind: input, shape index: {}]   ;;  %s110_s1 = inlined_call_operand.hbm [shape: f32[8,128], index: 1, kind: output, shape index: {}]  }
   0x1   :  { %7 = vsyncpa [#allocation4], 0  ;;  %s91_s6 = smov [#allocation2]  }
   0x2   :  { %s14_s7 = sshll.u32 %s91_s6, 4  ;;  %s15_s7 = int_to_ptr.vmem [resolvable:$true] %s14_s7 }
   0x3   :  { %s55_s8 = scalar_lea.vmem %s15_s7, 128  ;;  %p60_p1 = scmp.lt.s32.totalorder %s15_s7, %s15_s7 }
   0x4   :  { %p56_p0 = scmp.ne.s32.totalorder %s15_s7, %s55_s8  ;;  %p61_p2 = scmp.lt.s32.totalorder %s55_s8, %s55_s8 }
   0x6   :  { %p62_p3 = por %p61_p2, %p60_p1 }
   0x8   :  { %p63_p4 = pnand %p62_p3, %p56_p0 }
   0xa   :  { %66 = shalt.err (!%p63_p4)
}
   0xb   :  { %17 = dma.hbm_to_vmem [thread:$0]  %s109_s0, 128, %s15_s7, [#allocation3]  }
   0xc   :  { %87 = dma.done.wait [#allocation3], 128  }
   0xd   :  { %88 = vsyncadd [#allocation3], 4294967168  ;;  %v21_v0 = vld [vmem:[#allocation2] sm:$0xff]  ;;  %s92_s11 = smov [#allocation5]  }
   0xe   :  { %v23_v1 = vmul.f32 0.70710677, %v21_v0  ;;  %v22_v2 = vmul.f32 0.5, %v21_v0  ;;  %s34_s12 = sshll.u32 %s92_s11, 4  ;;  %s35_s12 = int_to_ptr.vmem [resolvable:$true] %s34_s12 }
   0xf   :  { %s67_s13 = scalar_lea.vmem %s35_s12, 128  ;;  %p72_p6 = scmp.lt.s32.totalorder %s35_s12, %s35_s12 }
  0x10   :  { %45 = verf.f32 %v23_v1  ;;  %p68_p5 = scmp.ne.s32.totalorder %s35_s12, %s67_s13  ;;  %p73_p7 = scmp.lt.s32.totalorder %s67_s13, %s67_s13 }
  0x12   :  { %p74_p8 = por %p73_p7, %p72_p6 }
  0x14   :  { %p75_p9 = pnand %p74_p8, %p68_p5 }
  0x1d   :  { %v46_v3 = vpop.eup %45 }
  0x1e   :  { %v25_v4 = vadd.f32 1.0, %v46_v3 }
  0x20   :  { %v26_v5 = vmul.f32 %v25_v4, %v22_v2 }
  0x22   :  { %27 = vst [vmem:[#allocation5] sm:$0xff] %v26_v5 }
  0x23   :  { %78 = shalt.err (!%p75_p9)
}
  0x24   :  { %37 = dma.vmem_to_hbm [thread:$0]  %s35_s12, 128, %s110_s1, [#allocation4]  }
  0x25   :  { %89 = dma.done.wait [#allocation4], 128  }
  0x26   :  { %90 = vsyncadd [#allocation4], 4294967168 }
  0x27   :  { %41 = vsyncpa [#allocation3], 1 }
  0x28   :  { %42 = vsyncpa [#allocation4], 1 }

// kernel: tpu_custom_call.1
= control target key start
LH: loop header
LB: loop body
LE: loop exit
PB: predicated region body
PF: predicated region fallthrough
CT: control target
= control target key end

     0   :  { %6 = vsyncpa [#allocation3], 0  ;;  %s109_s0 = inlined_call_operand.hbm [shape: f32[8,128], index: 0, kind: input, shape index: {}]   ;;  %s110_s1 = inlined_call_operand.hbm [shape: f32[8,128], index: 1, kind: output, shape index: {}]  }
   0x1   :  { %7 = vsyncpa [#allocation4], 0  ;;  %s91_s6 = smov [#allocation2]  }
   0x2   :  { %s14_s7 = sshll.u32 %s91_s6, 4  ;;  %s15_s7 = int_to_ptr.vmem [resolvable:$true] %s14_s7 }
   0x3   :  { %s55_s8 = scalar_lea.vmem %s15_s7, 128  ;;  %p60_p1 = scmp.lt.s32.totalorder %s15_s7, %s15_s7 }
   0x4   :  { %p56_p0 = scmp.ne.s32.totalorder %s15_s7, %s55_s8  ;;  %p61_p2 = scmp.lt.s32.totalorder %s55_s8, %s55_s8 }
   0x6   :  { %p62_p3 = por %p61_p2, %p60_p1 }
   0x8   :  { %p63_p4 = pnand %p62_p3, %p56_p0 }
   0xa   :  { %66 = shalt.err (!%p63_p4)
}
   0xb   :  { %17 = dma.hbm_to_vmem [thread:$0]  %s109_s0, 128, %s15_s7, [#allocation3]  }
   0xc   :  { %87 = dma.done.wait [#allocation3], 128  }
   0xd   :  { %88 = vsyncadd [#allocation3], 4294967168  ;;  %v21_v0 = vld [vmem:[#allocation2] sm:$0xff]  ;;  %s92_s11 = smov [#allocation5]  }
   0xe   :  { %v23_v1 = vmul.f32 0.70710677, %v21_v0  ;;  %v22_v2 = vmul.f32 0.5, %v21_v0  ;;  %s34_s12 = sshll.u32 %s92_s11, 4  ;;  %s35_s12 = int_to_ptr.vmem [resolvable:$true] %s34_s12 }
   0xf   :  { %s67_s13 = scalar_lea.vmem %s35_s12, 128  ;;  %p72_p6 = scmp.lt.s32.totalorder %s35_s12, %s35_s12 }
  0x10   :  { %45 = verf.f32 %v23_v1  ;;  %p68_p5 = scmp.ne.s32.totalorder %s35_s12, %s67_s13  ;;  %p73_p7 = scmp.lt.s32.totalorder %s67_s13, %s67_s13 }
  0x12   :  { %p74_p8 = por %p73_p7, %p72_p6 }
  0x14   :  { %p75_p9 = pnand %p74_p8, %p68_p5 }
  0x1d   :  { %v46_v3 = vpop.eup %45 }
  0x1e   :  { %v25_v4 = vadd.f32 1.0, %v46_v3 }
  0x20   :  { %v26_v5 = vmul.f32 %v25_v4, %v22_v2 }
  0x22   :  { %27 = vst [vmem:[#allocation5] sm:$0xff] %v26_v5 }
  0x23   :  { %78 = shalt.err (!%p75_p9)
}
  0x24   :  { %37 = dma.vmem_to_hbm [thread:$0]  %s35_s12, 128, %s110_s1, [#allocation4]  }
  0x25   :  { %89 = dma.done.wait [#allocation4], 128  }
  0x26   :  { %90 = vsyncadd [#allocation4], 4294967168 }
  0x27   :  { %41 = vsyncpa [#allocation3], 1 }
  0x28   :  { %42 = vsyncpa [#allocation4], 1 }

// kernel: tpu_custom_call.1
= control target key start
LH: loop header
LB: loop body
LE: loop exit
PB: predicated region body
PF: predicated region fallthrough
CT: control target
= control target key end

     0   :  { %s414_s0 = inlined_call_operand.vmem [shape: f32[2,256], index: 0, kind: input, shape index: {}]   ;;  %s415_s1 = inlined_call_operand.vmem [shape: bf16[256,4], index: 1, kind: input, shape index: {}]   ;;  %s416_s2 = inlined_call_operand.vmem [shape: f32[1,4], index: 2, kind: input, shape index: {}]   ;;  %s417_s3 = inlined_call_operand.hbm [shape: f32[2,4], index: 3, kind: output, shape index: {}]  }
   0x1   :  { %v288_v0 = vld [vmem:[%s415_s1 + $0x78] sm:$0xff]   ;;  %v290_v2 = vld [vmem:[%s415_s1 + $0x70] sm:$0xff]   ;;  %v292_v4 = vld [vmem:[%s415_s1 + $0x68] sm:$0xff]  }
   0x2   :  { %v289_v1 = vld [vmem:[%s415_s1 + $0x38] sm:$0xff]   ;;  %264 = vmatprep.subr.bf16.mxu0 %v288_v0  ;;  %v291_v3 = vld [vmem:[%s415_s1 + $0x30] sm:$0xff]   ;;  %v293_v5 = vld [vmem:[%s415_s1 + $0x28] sm:$0xff]  }
   0x3   :  { %265 = vmatpush3.bf16.msra.mxu0 %v289_v1  ;;  %v294_v6 = vld [vmem:[%s415_s1 + $0x60] sm:$0xff]   ;;  %v296_v8 = vld [vmem:[%s415_s1 + $0x58] sm:$0xff]   ;;  %v298_v10 = vld [vmem:[%s415_s1 + $0x50] sm:$0xff]  }
   0x4   :  { %266 = vmatprep.subr.bf16.mxu0 %v290_v2  ;;  %v295_v7 = vld [vmem:[%s415_s1 + $0x20] sm:$0xff]   ;;  %v297_v9 = vld [vmem:[%s415_s1 + $0x18] sm:$0xff]  }
   0x5   :  { %v246_v11 = vld.sshfl [vmem:[%s414_s0] sm:$0x33 pattern:$0x76325410] }
   0x7   :  { %267 = vmatpush3.bf16.msra.mxu0 %v291_v3 }
   0x8   :  { %268 = vmatprep.subr.bf16.mxu0 %v292_v4 }
   0xb   :  { %269 = vmatpush3.bf16.msra.mxu0 %v293_v5 }
   0xc   :  { %270 = vmatprep.subr.bf16.mxu0 %v294_v6 }
   0xf   :  { %271 = vmatpush3.bf16.msra.mxu0 %v295_v7 }
  0x10   :  { %272 = vmatprep.subr.bf16.mxu0 %v296_v8 }
  0x11   :  { %8 = vsyncpa [#allocation4], 0  ;;  %v32_v12 = vcombine.high %v246_v11, %v246_v11  ;;  %v299_v13 = vld [vmem:[%s415_s1 + $0x10] sm:$0xff]   ;;  %v300_v15 = vld [vmem:[%s415_s1 + $0x48] sm:$0xff]   ;;  %v35_v19 = vpack.c.bf16 %v246_v11, %v246_v11  ;;  %vm20_vm0 = vcmask 25600   ;;  %v330_v20 = vmov 0.0  }
  0x12   :  { %v301_v16 = vld [vmem:[%s415_s1 + $0x8] sm:$0xff]   ;;  %v302_v17 = vld [vmem:[%s415_s1 + $0x40] sm:$0xff]   ;;  %21 = vst.msk [vmem:[#allocation2] sm:$0x3] %vm20_vm0, %v330_v20 }
  0x13   :  { %273 = vmatpush3.bf16.msra.mxu0 %v297_v9  ;;  %v36_v14 = vpack.c.bf16 %v32_v12, %v32_v12  ;;  %v303_v18 = vld [vmem:[%s415_s1] sm:$0xff]   ;;  %s331_s1 = smov [#allocation3]  }
  0x14   :  { %274 = vmatprep.subr.bf16.mxu0 %v298_v10  ;;  %v263_v28 = vld [vmem:[%s416_s2] ss:$0 sm:$0xff]  ;;  %s238_s20 = sshll.u32 %s331_s1, 4  ;;  %s239_s20 = int_to_ptr.vmem [resolvable:$true] %s238_s20 }
  0x15   :  { %197 = vmatprep.mubr.bf16.mxu0 %v36_v14  ;;  %s308_s2 = scalar_lea.vmem %s239_s20, 32  ;;  %p313_p1 = scmp.lt.s32.totalorder %s239_s20, %s239_s20 }
  0x16   :  { %p309_p0 = scmp.ne.s32.totalorder %s239_s20, %s308_s2  ;;  %p314_p2 = scmp.lt.s32.totalorder %s308_s2, %s308_s2 }
  0x17   :  { %275 = vmatpush3.bf16.msra.mxu0 %v299_v13 }
  0x18   :  { %276 = vmatprep.subr.bf16.mxu0 %v300_v15  ;;  %p315_p3 = por %p314_p2, %p313_p1 }
  0x19   :  { %v22_v22 = vld [vmem:[#allocation2] sm:$0x3] }
  0x1a   :  { %p316_p4 = pnand %p315_p3, %p309_p0 }
  0x1b   :  { %277 = vmatpush3.bf16.msra.mxu0 %v301_v16 }
  0x1c   :  { %278 = vmatprep.subr.bf16.mxu0 %v302_v17 }
  0x1f   :  { %279 = vmatpush3.bf16.msra.mxu0 %v303_v18 }
  0x22   :  { %198 = vmatmul.mubr.bf16.vlgmr.msra.gmra.mxu0 %v35_v19 }
  0xe2   :  { %v280_v21 = vpop.f32.mrf.mxu0 }
  0xe4   :  { %v281_v23 = vpop.f32.mrf.mxu0 }
  0xe5   :  { %v282_v24 = vadd.f32 %v281_v23, %v280_v21 }
  0xe6   :  { %v283_v25 = vpop.f32.mrf.mxu0 }
  0xe7   :  { %v205_v26 = vadd.f32 %v282_v24, %v22_v22 }
  0xe8   :  { %v284_v27 = vpop.f32.mrf.mxu0 }
  0xe9   :  { %207 = vst.msk [vmem:[#allocation2] sm:$0x3] %vm20_vm0, %v205_v26 }
  0xf0   :  { %v211_v29 = vld [vmem:[#allocation2] sm:$0x3] }
  0xf1   :  { %v219_v30 = vadd.f32 %v263_v28, %v211_v29 }
  0xf3   :  { %v220_v31 = vsel %vm20_vm0, %v219_v30, -inf }
  0xf4   :  { %221 = vmax.xlane.f32.xlu0 %v220_v31 }
 0x17d   :  { %v222_v32 = vpop.xlane.xlu0 %221 }
 0x17e   :  { %v223_v33 = vsub.f32 %v219_v30, %v222_v32 }
 0x180   :  { %v224_v34 = vmul.f32 1.442695, %v223_v33 }
 0x182   :  { %304 = vpow2.f32 %v224_v34 }
 0x18f   :  { %v305_v35 = vpop.eup %304 }
 0x190   :  { %v226_v36 = vsel %vm20_vm0, %v305_v35, 0.0 }
 0x191   :  { %227 = vadd.xlane.f32.xlu0 %v226_v36 }
 0x21a   :  { %v228_v37 = vpop.xlane.xlu0 %227 }
 0x21b   :  { %306 = vrcp.f32 %v228_v37 }
 0x228   :  { %v307_v38 = vpop.eup %306 }
 0x229   :  { %v230_v39 = vmul.f32 %v307_v38, %v305_v35 }
 0x22b   :  { %231 = vst.msk [vmem:[#allocation3] sm:$0x3] %vm20_vm0, %v230_v39 }
 0x22c   :  { %319 = shalt.err (!%p316_p4)
}
 0x22d   :  { %241 = dma.vmem_to_hbm [thread:$0]  %s239_s20, 32, %s417_s3, [#allocation4]  }
 0x22e   :  { %328 = dma.done.wait [#allocation4], 32  }
 0x22f   :  { %329 = vsyncadd [#allocation4], 4294967264 }
 0x230   :  { %245 = vsyncpa [#allocation4], 1 }

</bundles_post_ra>
